<compile_context>
chip_gen: v5e
topology: v5e:2x2
jax: 0.10.0
libtpu: 0.0.40
codegen_flags: <defaults>
</compile_context>

<pallas_src>
import jax
import jax.numpy as jnp
from jax import lax
from jax.experimental import pallas as pl
from jax.experimental.pallas import tpu as pltpu  # noqa: F401  (TPU backend)

# ---- model hyper-parameters (small, consistent with the module) -------------
EMBED = 32          # embed_size
HEADS = 4           # heads
HEAD_DIM = EMBED // HEADS   # 8
FWD_EXP = 4         # forward_expansion
HIDDEN = FWD_EXP * EMBED    # 128
SEQ = 8
BATCH = 2
BS = BATCH * SEQ            # 16  rows of every activation matmul
HS = HEADS * SEQ            # 32  lane-packed per-head score columns
EPS = 1e-5                  # nn.LayerNorm default eps
NEG_INF = -1e20

# One (32,32) block selector is shared by the K / V block-diagonal construction
# and the softmax segment-sum matmul; this relies on HEAD_DIM == SEQ (== 8).
assert HEAD_DIM == SEQ and HS == EMBED


def _layernorm(x, gamma, beta):
    mu = jnp.mean(x, axis=-1, keepdims=True)
    var = jnp.mean((x - mu) ** 2, axis=-1, keepdims=True)
    return (x - mu) * lax.rsqrt(var + EPS) * gamma + beta


# ----------------------------- Pallas kernel ---------------------------------
def transformer_block_kernel(
    qkv_ref,     # (3*BS, EMBED)    rows: [query; key; value]
    bias_ref,    # (BS, HS)         additive mask bias, tiled over heads
    w_qkv_ref,   # (EMBED, 3*EMBED) fused block-diag projections [Wq*scale|Wk|Wv]
    w_fc_ref,    # (EMBED, EMBED)   attention output projection (pre-transposed)
    w1_ref,      # (EMBED, HIDDEN)  FF linear1 (pre-transposed)
    w2_ref,      # (HIDDEN, EMBED)  FF linear2 (pre-transposed)
    vecs_ref,    # (8, HIDDEN)      packed bias / gamma / beta rows
    out_ref,     # (BS, EMBED)
):
    qkv = qkv_ref[...]
    q_in = qkv[0:BS, :]                       # original query (residual path)

    # --- fused q/k/v per-head projections: ONE MXU matmul ---------------------
    # Diagonal (16,32) blocks of y hold q@Wq*scale, k@Wk, v@Wv (heads packed
    # along lanes in blocks of HEAD_DIM).
    y = jnp.dot(qkv, w_qkv_ref[...], preferred_element_type=jnp.float32)
    qp = y[0:BS, 0:EMBED]
    kp = y[BS:2 * BS, EMBED:2 * EMBED]
    vp = y[2 * BS:3 * BS, 2 * EMBED:3 * EMBED]

    # --- block selector (i//8 == j//8), generated in-kernel (no DMA) ----------
    hshift = HEAD_DIM.bit_length() - 1        # HEAD_DIM == 8 -> shift by 3
    r = lax.broadcasted_iota(jnp.int32, (HS, HS), 0)
    c = lax.broadcasted_iota(jnp.int32, (HS, HS), 1)
    blk = ((r >> hshift) == (c >> hshift)).astype(jnp.float32)   # (32, 32)

    # --- attention scores: per batch, ONE (8,32)@(32,32) block-diag matmul ----
    # kblk[h*S+k, e] = K_b[k, e] * (e in head h), so contracting qb against it
    # over e yields all heads' scores lane-packed as columns h*S+k.
    e_rows = []
    for b in range(BATCH):
        qb = qp[b * SEQ:(b + 1) * SEQ, :]                       # (S, E)
        kb = kp[b * SEQ:(b + 1) * SEQ, :]                       # (S, E)
        kblk = jnp.concatenate([kb] * HEADS, axis=0) * blk      # (HS, E)
        e_rows.append(jnp.einsum("qe,je->qj", qb, kblk,
                                 preferred_element_type=jnp.float32))
    energy = jnp.concatenate(e_rows, axis=0) + bias_ref[...]    # (BS, HS)

    # --- softmax over width-SEQ head segments ---------------------------------
    # The per-row global max is constant within each segment, so subtracting it
    # leaves every segment softmax unchanged while preventing exp overflow.
    m = jnp.max(energy, axis=-1, keepdims=True)
    p = jnp.exp(energy - m)
    denom = jnp.dot(p, blk, preferred_element_type=jnp.float32)  # segment sums
    attn = p * pl.reciprocal(denom, approx=True)

    # --- attn @ V: same block-diagonal trick; heads come out already merged ---
    ctx_rows = []
    for b in range(BATCH):
        vb = vp[b * SEQ:(b + 1) * SEQ, :]                       # (S, E)
        vblk = jnp.concatenate([vb] * HEADS, axis=0) * blk      # (HS, E)
        ab = attn[b * SEQ:(b + 1) * SEQ, :]                     # (S, HS)
        ctx_rows.append(jnp.dot(ab, vblk,
                                preferred_element_type=jnp.float32))
    ctx = jnp.concatenate(ctx_rows, axis=0)                     # (BS, E)

    # --- unpack small parameter vectors (single DMA'd tile) -------------------
    vec = vecs_ref[...]
    bfc = vec[0:1, :EMBED]
    g1, be1 = vec[1:2, :EMBED], vec[2:3, :EMBED]
    bb1 = vec[3:4, :]
    bb2 = vec[4:5, :EMBED]
    g2, be2 = vec[5:6, :EMBED], vec[6:7, :EMBED]

    # --- output projection, residual + LayerNorm1 -----------------------------
    attn_out = jnp.dot(ctx, w_fc_ref[...],
                       preferred_element_type=jnp.float32) + bfc
    x = _layernorm(attn_out + q_in, g1, be1)
    # TODO(synk): nn.Dropout not applied (inference-mode identity; no RNG drawn).

    # --- feed-forward: Linear -> ReLU -> Linear, residual + LayerNorm2 --------
    h1 = jnp.maximum(
        jnp.dot(x, w1_ref[...], preferred_element_type=jnp.float32) + bb1, 0.0)
    ff = jnp.dot(h1, w2_ref[...], preferred_element_type=jnp.float32) + bb2
    out_ref[...] = _layernorm(ff + x, g2, be2)


# --------------------- one-time parameter preparation -------------------------
def prepare_params(params):
    """Run ONCE at parameter-init time (not per call): block-diagonal per-head
    projections with 1/sqrt(E) folded into Wq, fused into one (E,3E) weight;
    fc/FF weights pre-transposed; the seven small bias/gamma/beta vectors
    packed into a single (8, HIDDEN) tile (one DMA instead of seven)."""
    eye = jnp.eye(HEADS, dtype=jnp.float32)
    scale = 1.0 / jnp.sqrt(jnp.float32(EMBED))
    wq_b = jnp.kron(eye, params["wq"].T) * scale
    wk_b = jnp.kron(eye, params["wk"].T)
    wv_b = jnp.kron(eye, params["wv"].T)

    vecs = jnp.zeros((8, HIDDEN), jnp.float32)
    vecs = vecs.at[0, :EMBED].set(params["bfc"])
    vecs = vecs.at[1, :EMBED].set(params["g1"])
    vecs = vecs.at[2, :EMBED].set(params["be1"])
    vecs = vecs.at[3, :HIDDEN].set(params["bb1"])
    vecs = vecs.at[4, :EMBED].set(params["bb2"])
    vecs = vecs.at[5, :EMBED].set(params["g2"])
    vecs = vecs.at[6, :EMBED].set(params["be2"])

    return {
        "w_qkv": jnp.concatenate([wq_b, wk_b, wv_b], axis=1),   # (E, 3E)
        "w_fc": params["wfc"].T,
        "w1": params["w1"].T,
        "w2": params["w2"].T,
        "vecs": vecs,
    }


# ------------------------------- wrapper --------------------------------------
@jax.jit
def transformer_block(value, key, query, mask, prep):
    flat = lambda a: a.reshape(BS, EMBED)
    # one activation operand instead of three
    qkv = jnp.concatenate([flat(query), flat(key), flat(value)], axis=0)

    # pre-baked additive mask bias, tiled over heads along lanes: (BS, HS)
    bias = jnp.where(mask.reshape(BATCH, SEQ, SEQ) == 0,
                     jnp.float32(NEG_INF), jnp.float32(0.0))
    bias = jnp.tile(bias, (1, 1, HEADS)).reshape(BS, HS)

    out = pl.pallas_call(
        transformer_block_kernel,
        out_shape=jax.ShapeDtypeStruct((BS, EMBED), jnp.float32),
    )(qkv, bias, prep["w_qkv"], prep["w_fc"], prep["w1"], prep["w2"],
      prep["vecs"])
    return out.reshape(BATCH, SEQ, EMBED)


# ------------------------ pure-JAX reference (for checking) -------------------
def reference(value, key, query, mask, p):
    N, S, E = query.shape
    split = lambda x: x.reshape(N, S, HEADS, HEAD_DIM)
    v = split(value) @ p["wv"].T
    k = split(key) @ p["wk"].T
    q = split(query) @ p["wq"].T
    energy = jnp.einsum("nqhd,nkhd->nhqk", q, k)
    energy = jnp.where(mask == 0, -1e20, energy)
    attn = jax.nn.softmax(energy / jnp.sqrt(jnp.float32(E)), axis=3)
    out = jnp.einsum("nhqk,nkhd->nqhd", attn, v).reshape(N, S, E)
    out = out @ p["wfc"].T + p["bfc"]
    x = _layernorm(out + query, p["g1"], p["be1"])
    ff = jnp.maximum(x @ p["w1"].T + p["bb1"], 0.0) @ p["w2"].T + p["bb2"]
    return _layernorm(ff + x, p["g2"], p["be2"])


def make_params(rng):
    keys = jax.random.split(rng, 9)
    init = lambda k, shape: 0.3 * jax.random.normal(k, shape, jnp.float32)
    return {
        "wv": init(keys[0], (HEAD_DIM, HEAD_DIM)),
        "wk": init(keys[1], (HEAD_DIM, HEAD_DIM)),
        "wq": init(keys[2], (HEAD_DIM, HEAD_DIM)),
        "wfc": init(keys[3], (EMBED, EMBED)),
        "bfc": init(keys[4], (EMBED,)),
        "g1": jnp.ones((EMBED,), jnp.float32),
        "be1": jnp.zeros((EMBED,), jnp.float32),
        "w1": init(keys[5], (HIDDEN, EMBED)),
        "bb1": init(keys[6], (HIDDEN,)),
        "w2": init(keys[7], (EMBED, HIDDEN)),
        "bb2": init(keys[8], (EMBED,)),
        "g2": jnp.ones((EMBED,), jnp.float32),
        "be2": jnp.zeros((EMBED,), jnp.float32),
    }


if __name__ == "__main__":
    root = jax.random.PRNGKey(0)
    kv, kk, kq, kparam = jax.random.split(root, 4)
    value = jax.random.normal(kv, (BATCH, SEQ, EMBED), jnp.float32)
    key = jax.random.normal(kk, (BATCH, SEQ, EMBED), jnp.float32)
    query = jax.random.normal(kq, (BATCH, SEQ, EMBED), jnp.float32)
    # causal mask, broadcastable to (N, heads, q_len, k_len)
    mask = jnp.tril(jnp.ones((SEQ, SEQ), jnp.float32))[None, None].repeat(BATCH, 0)
    params = make_params(kparam)

    prep = prepare_params(params)          # one-time weight prep (init time)

    out = transformer_block(value, key, query, mask, prep)
    out = jax.block_until_ready(out)

    ref = reference(value, key, query, mask, params)
    assert out.shape == (BATCH, SEQ, EMBED)
    assert jnp.allclose(out, ref, atol=5e-3, rtol=5e-3), \
        f"max abs err = {jnp.max(jnp.abs(out - ref))}"
    print("KERNEL_OK")
</pallas_src>

<mosaic_0001>
module attributes {stable_mosaic.version = 11 : i64} {
  func.func @transformer_block_kernel(%arg0: memref<48x32xf32, #tpu.memory_space<vmem>>, %arg1: memref<16x32xf32, #tpu.memory_space<vmem>>, %arg2: memref<32x96xf32, #tpu.memory_space<vmem>>, %arg3: memref<32x32xf32, #tpu.memory_space<vmem>>, %arg4: memref<32x128xf32, #tpu.memory_space<vmem>>, %arg5: memref<128x32xf32, #tpu.memory_space<vmem>>, %arg6: memref<8x128xf32, #tpu.memory_space<vmem>>, %arg7: memref<16x32xf32, #tpu.memory_space<vmem>>) attributes {dimension_semantics = [], scalar_prefetch = 0 : i64, scratch_operands = 0 : i64, tpu.core_type = #tpu.core_type<tc>} {
    %c0 = arith.constant 0 : index
    %c0_0 = arith.constant 0 : index
    %0 = vector.load %arg0[%c0, %c0_0] : memref<48x32xf32, #tpu.memory_space<vmem>>, vector<48x32xf32>
    %1 = vector.extract_strided_slice %0 {offsets = [0, 0], sizes = [16, 32], strides = [1, 1]} : vector<48x32xf32> to vector<16x32xf32>
    %c0_1 = arith.constant 0 : index
    %c0_2 = arith.constant 0 : index
    %2 = vector.load %arg2[%c0_1, %c0_2] : memref<32x96xf32, #tpu.memory_space<vmem>>, vector<32x96xf32>
    %cst = arith.constant dense<0.000000e+00> : vector<48x96xf32>
    %3 = tpu.matmul %0, %2, %cst {dimension_numbers = #tpu.dot_dimension_numbers<[1], [0], [0], [1], [0, 0, 1, 1], [], []>} : vector<48x32xf32>, vector<32x96xf32>, vector<48x96xf32> -> vector<48x96xf32>
    %4 = vector.extract_strided_slice %3 {offsets = [0, 0], sizes = [16, 32], strides = [1, 1]} : vector<48x96xf32> to vector<16x32xf32>
    %5 = vector.extract_strided_slice %3 {offsets = [16, 32], sizes = [16, 32], strides = [1, 1]} : vector<48x96xf32> to vector<16x32xf32>
    %6 = vector.extract_strided_slice %3 {offsets = [32, 64], sizes = [16, 32], strides = [1, 1]} : vector<48x96xf32> to vector<16x32xf32>
    %7 = tpu.iota {dimensions = array<i32: 0>} : vector<32x32xi32>
    %8 = tpu.iota {dimensions = array<i32: 1>} : vector<32x32xi32>
    %c3_i32 = arith.constant 3 : i32
    %9 = vector.broadcast %c3_i32 : i32 to vector<32x32xi32>
    %10 = arith.shrsi %7, %9 : vector<32x32xi32>
    %c3_i32_3 = arith.constant 3 : i32
    %11 = vector.broadcast %c3_i32_3 : i32 to vector<32x32xi32>
    %12 = arith.shrsi %8, %11 : vector<32x32xi32>
    %13 = arith.cmpi eq, %10, %12 : vector<32x32xi32>
    %14 = arith.extui %13 : vector<32x32xi1> to vector<32x32xi32>
    %15 = arith.sitofp %14 : vector<32x32xi32> to vector<32x32xf32>
    %16 = vector.extract_strided_slice %4 {offsets = [0, 0], sizes = [8, 32], strides = [1, 1]} : vector<16x32xf32> to vector<8x32xf32>
    %17 = vector.extract_strided_slice %5 {offsets = [0, 0], sizes = [8, 32], strides = [1, 1]} : vector<16x32xf32> to vector<8x32xf32>
    %18 = tpu.concatenate %17, %17, %17, %17 in 0 : vector<8x32xf32>, vector<8x32xf32>, vector<8x32xf32>, vector<8x32xf32> -> vector<32x32xf32>
    %19 = arith.mulf %18, %15 : vector<32x32xf32>
    "tpu.trace_start"() <{level = 10 : i32, message = "qe,je->qj"}> : () -> ()
    %cst_4 = arith.constant dense<0.000000e+00> : vector<8x32xf32>
    %20 = tpu.matmul %16, %19, %cst_4 {dimension_numbers = #tpu.dot_dimension_numbers<[1], [1], [0], [0], [0, 0, 1, 0], [], []>} : vector<8x32xf32>, vector<32x32xf32>, vector<8x32xf32> -> vector<8x32xf32>
    "tpu.trace_stop"() : () -> ()
    %21 = vector.extract_strided_slice %4 {offsets = [8, 0], sizes = [8, 32], strides = [1, 1]} : vector<16x32xf32> to vector<8x32xf32>
    %22 = vector.extract_strided_slice %5 {offsets = [8, 0], sizes = [8, 32], strides = [1, 1]} : vector<16x32xf32> to vector<8x32xf32>
    %23 = tpu.concatenate %22, %22, %22, %22 in 0 : vector<8x32xf32>, vector<8x32xf32>, vector<8x32xf32>, vector<8x32xf32> -> vector<32x32xf32>
    %24 = arith.mulf %23, %15 : vector<32x32xf32>
    "tpu.trace_start"() <{level = 10 : i32, message = "qe,je->qj"}> : () -> ()
    %cst_5 = arith.constant dense<0.000000e+00> : vector<8x32xf32>
    %25 = tpu.matmul %21, %24, %cst_5 {dimension_numbers = #tpu.dot_dimension_numbers<[1], [1], [0], [0], [0, 0, 1, 0], [], []>} : vector<8x32xf32>, vector<32x32xf32>, vector<8x32xf32> -> vector<8x32xf32>
    "tpu.trace_stop"() : () -> ()
    %26 = tpu.concatenate %20, %25 in 0 : vector<8x32xf32>, vector<8x32xf32> -> vector<16x32xf32>
    %c0_6 = arith.constant 0 : index
    %c0_7 = arith.constant 0 : index
    %27 = vector.load %arg1[%c0_6, %c0_7] : memref<16x32xf32, #tpu.memory_space<vmem>>, vector<16x32xf32>
    %28 = arith.addf %26, %27 : vector<16x32xf32>
    %cst_8 = arith.constant dense<0xFF800000> : vector<16xf32>
    %29 = vector.multi_reduction <maximumf>, %28, %cst_8 [1] : vector<16x32xf32> to vector<16xf32>
    %30 = vector.shape_cast %29 : vector<16xf32> to vector<16x1xf32>
    %31 = vector.broadcast %30 : vector<16x1xf32> to vector<16x32xf32>
    %32 = arith.subf %28, %31 : vector<16x32xf32>
    %33 = math.exp %32 : vector<16x32xf32>
    %cst_9 = arith.constant dense<0.000000e+00> : vector<16x32xf32>
    %34 = tpu.matmul %33, %15, %cst_9 {dimension_numbers = #tpu.dot_dimension_numbers<[1], [0], [0], [1], [0, 0, 1, 1], [], []>} : vector<16x32xf32>, vector<32x32xf32>, vector<16x32xf32> -> vector<16x32xf32>
    %35 = tpu.reciprocal %34 {approx = true} : vector<16x32xf32> -> vector<16x32xf32>
    %36 = arith.mulf %33, %35 : vector<16x32xf32>
    %37 = vector.extract_strided_slice %6 {offsets = [0, 0], sizes = [8, 32], strides = [1, 1]} : vector<16x32xf32> to vector<8x32xf32>
    %38 = tpu.concatenate %37, %37, %37, %37 in 0 : vector<8x32xf32>, vector<8x32xf32>, vector<8x32xf32>, vector<8x32xf32> -> vector<32x32xf32>
    %39 = arith.mulf %38, %15 : vector<32x32xf32>
    %40 = vector.extract_strided_slice %36 {offsets = [0, 0], sizes = [8, 32], strides = [1, 1]} : vector<16x32xf32> to vector<8x32xf32>
    %cst_10 = arith.constant dense<0.000000e+00> : vector<8x32xf32>
    %41 = tpu.matmul %40, %39, %cst_10 {dimension_numbers = #tpu.dot_dimension_numbers<[1], [0], [0], [1], [0, 0, 1, 1], [], []>} : vector<8x32xf32>, vector<32x32xf32>, vector<8x32xf32> -> vector<8x32xf32>
    %42 = vector.extract_strided_slice %6 {offsets = [8, 0], sizes = [8, 32], strides = [1, 1]} : vector<16x32xf32> to vector<8x32xf32>
    %43 = tpu.concatenate %42, %42, %42, %42 in 0 : vector<8x32xf32>, vector<8x32xf32>, vector<8x32xf32>, vector<8x32xf32> -> vector<32x32xf32>
    %44 = arith.mulf %43, %15 : vector<32x32xf32>
    %45 = vector.extract_strided_slice %36 {offsets = [8, 0], sizes = [8, 32], strides = [1, 1]} : vector<16x32xf32> to vector<8x32xf32>
    %cst_11 = arith.constant dense<0.000000e+00> : vector<8x32xf32>
    %46 = tpu.matmul %45, %44, %cst_11 {dimension_numbers = #tpu.dot_dimension_numbers<[1], [0], [0], [1], [0, 0, 1, 1], [], []>} : vector<8x32xf32>, vector<32x32xf32>, vector<8x32xf32> -> vector<8x32xf32>
    %47 = tpu.concatenate %41, %46 in 0 : vector<8x32xf32>, vector<8x32xf32> -> vector<16x32xf32>
    %c0_12 = arith.constant 0 : index
    %c0_13 = arith.constant 0 : index
    %48 = vector.load %arg6[%c0_12, %c0_13] : memref<8x128xf32, #tpu.memory_space<vmem>>, vector<8x128xf32>
    %49 = vector.extract_strided_slice %48 {offsets = [0, 0], sizes = [1, 32], strides = [1, 1]} : vector<8x128xf32> to vector<1x32xf32>
    %50 = vector.extract_strided_slice %48 {offsets = [1, 0], sizes = [1, 32], strides = [1, 1]} : vector<8x128xf32> to vector<1x32xf32>
    %51 = vector.extract_strided_slice %48 {offsets = [2, 0], sizes = [1, 32], strides = [1, 1]} : vector<8x128xf32> to vector<1x32xf32>
    %52 = vector.extract_strided_slice %48 {offsets = [3, 0], sizes = [1, 128], strides = [1, 1]} : vector<8x128xf32> to vector<1x128xf32>
    %53 = vector.extract_strided_slice %48 {offsets = [4, 0], sizes = [1, 32], strides = [1, 1]} : vector<8x128xf32> to vector<1x32xf32>
    %54 = vector.extract_strided_slice %48 {offsets = [5, 0], sizes = [1, 32], strides = [1, 1]} : vector<8x128xf32> to vector<1x32xf32>
    %55 = vector.extract_strided_slice %48 {offsets = [6, 0], sizes = [1, 32], strides = [1, 1]} : vector<8x128xf32> to vector<1x32xf32>
    %c0_14 = arith.constant 0 : index
    %c0_15 = arith.constant 0 : index
    %56 = vector.load %arg3[%c0_14, %c0_15] : memref<32x32xf32, #tpu.memory_space<vmem>>, vector<32x32xf32>
    %cst_16 = arith.constant dense<0.000000e+00> : vector<16x32xf32>
    %57 = tpu.matmul %47, %56, %cst_16 {dimension_numbers = #tpu.dot_dimension_numbers<[1], [0], [0], [1], [0, 0, 1, 1], [], []>} : vector<16x32xf32>, vector<32x32xf32>, vector<16x32xf32> -> vector<16x32xf32>
    %58 = vector.broadcast %49 : vector<1x32xf32> to vector<16x32xf32>
    %59 = arith.addf %57, %58 : vector<16x32xf32>
    %60 = arith.addf %59, %1 : vector<16x32xf32>
    %cst_17 = arith.constant dense<0.000000e+00> : vector<16xf32>
    %61 = vector.multi_reduction <add>, %60, %cst_17 [1] : vector<16x32xf32> to vector<16xf32>
    %62 = vector.shape_cast %61 : vector<16xf32> to vector<16x1xf32>
    %cst_18 = arith.constant 3.200000e+01 : f32
    %63 = vector.broadcast %cst_18 : f32 to vector<16x1xf32>
    %64 = arith.divf %62, %63 : vector<16x1xf32>
    %65 = vector.broadcast %64 : vector<16x1xf32> to vector<16x32xf32>
    %66 = arith.subf %60, %65 : vector<16x32xf32>
    %67 = arith.mulf %66, %66 : vector<16x32xf32>
    %cst_19 = arith.constant dense<0.000000e+00> : vector<16xf32>
    %68 = vector.multi_reduction <add>, %67, %cst_19 [1] : vector<16x32xf32> to vector<16xf32>
    %69 = vector.shape_cast %68 : vector<16xf32> to vector<16x1xf32>
    %cst_20 = arith.constant 3.200000e+01 : f32
    %70 = vector.broadcast %cst_20 : f32 to vector<16x1xf32>
    %71 = arith.divf %69, %70 : vector<16x1xf32>
    %72 = vector.broadcast %64 : vector<16x1xf32> to vector<16x32xf32>
    %73 = arith.subf %60, %72 : vector<16x32xf32>
    %cst_21 = arith.constant 9.99999974E-6 : f32
    %74 = vector.broadcast %cst_21 : f32 to vector<16x1xf32>
    %75 = arith.addf %71, %74 : vector<16x1xf32>
    %76 = math.rsqrt %75 : vector<16x1xf32>
    %77 = vector.broadcast %76 : vector<16x1xf32> to vector<16x32xf32>
    %78 = arith.mulf %73, %77 : vector<16x32xf32>
    %79 = vector.broadcast %50 : vector<1x32xf32> to vector<16x32xf32>
    %80 = arith.mulf %78, %79 : vector<16x32xf32>
    %81 = vector.broadcast %51 : vector<1x32xf32> to vector<16x32xf32>
    %82 = arith.addf %80, %81 : vector<16x32xf32>
    %c0_22 = arith.constant 0 : index
    %c0_23 = arith.constant 0 : index
    %83 = vector.load %arg4[%c0_22, %c0_23] : memref<32x128xf32, #tpu.memory_space<vmem>>, vector<32x128xf32>
    %cst_24 = arith.constant dense<0.000000e+00> : vector<16x128xf32>
    %84 = tpu.matmul %82, %83, %cst_24 {dimension_numbers = #tpu.dot_dimension_numbers<[1], [0], [0], [1], [0, 0, 1, 1], [], []>} : vector<16x32xf32>, vector<32x128xf32>, vector<16x128xf32> -> vector<16x128xf32>
    %85 = vector.broadcast %52 : vector<1x128xf32> to vector<16x128xf32>
    %86 = arith.addf %84, %85 : vector<16x128xf32>
    %cst_25 = arith.constant 0.000000e+00 : f32
    %87 = vector.broadcast %cst_25 : f32 to vector<16x128xf32>
    %88 = arith.maximumf %86, %87 : vector<16x128xf32>
    %c0_26 = arith.constant 0 : index
    %c0_27 = arith.constant 0 : index
    %89 = vector.load %arg5[%c0_26, %c0_27] : memref<128x32xf32, #tpu.memory_space<vmem>>, vector<128x32xf32>
    %cst_28 = arith.constant dense<0.000000e+00> : vector<16x32xf32>
    %90 = tpu.matmul %88, %89, %cst_28 {dimension_numbers = #tpu.dot_dimension_numbers<[1], [0], [0], [1], [0, 0, 1, 1], [], []>} : vector<16x128xf32>, vector<128x32xf32>, vector<16x32xf32> -> vector<16x32xf32>
    %91 = vector.broadcast %53 : vector<1x32xf32> to vector<16x32xf32>
    %92 = arith.addf %90, %91 : vector<16x32xf32>
    %93 = arith.addf %92, %82 : vector<16x32xf32>
    %cst_29 = arith.constant dense<0.000000e+00> : vector<16xf32>
    %94 = vector.multi_reduction <add>, %93, %cst_29 [1] : vector<16x32xf32> to vector<16xf32>
    %95 = vector.shape_cast %94 : vector<16xf32> to vector<16x1xf32>
    %cst_30 = arith.constant 3.200000e+01 : f32
    %96 = vector.broadcast %cst_30 : f32 to vector<16x1xf32>
    %97 = arith.divf %95, %96 : vector<16x1xf32>
    %98 = vector.broadcast %97 : vector<16x1xf32> to vector<16x32xf32>
    %99 = arith.subf %93, %98 : vector<16x32xf32>
    %100 = arith.mulf %99, %99 : vector<16x32xf32>
    %cst_31 = arith.constant dense<0.000000e+00> : vector<16xf32>
    %101 = vector.multi_reduction <add>, %100, %cst_31 [1] : vector<16x32xf32> to vector<16xf32>
    %102 = vector.shape_cast %101 : vector<16xf32> to vector<16x1xf32>
    %cst_32 = arith.constant 3.200000e+01 : f32
    %103 = vector.broadcast %cst_32 : f32 to vector<16x1xf32>
    %104 = arith.divf %102, %103 : vector<16x1xf32>
    %105 = vector.broadcast %97 : vector<16x1xf32> to vector<16x32xf32>
    %106 = arith.subf %93, %105 : vector<16x32xf32>
    %cst_33 = arith.constant 9.99999974E-6 : f32
    %107 = vector.broadcast %cst_33 : f32 to vector<16x1xf32>
    %108 = arith.addf %104, %107 : vector<16x1xf32>
    %109 = math.rsqrt %108 : vector<16x1xf32>
    %110 = vector.broadcast %109 : vector<16x1xf32> to vector<16x32xf32>
    %111 = arith.mulf %106, %110 : vector<16x32xf32>
    %112 = vector.broadcast %54 : vector<1x32xf32> to vector<16x32xf32>
    %113 = arith.mulf %111, %112 : vector<16x32xf32>
    %114 = vector.broadcast %55 : vector<1x32xf32> to vector<16x32xf32>
    %115 = arith.addf %113, %114 : vector<16x32xf32>
    %c0_34 = arith.constant 0 : index
    %c0_35 = arith.constant 0 : index
    %116 = vector.load %arg7[%c0_34, %c0_35] : memref<16x32xf32, #tpu.memory_space<vmem>>, vector<16x32xf32>
    tpu.vector_store %arg7[%c0_34, %c0_35], %115 {strides = array<i32>} : memref<16x32xf32, #tpu.memory_space<vmem>>, vector<16x32xf32>,
    return
  }
}

</mosaic_0001>

<bundles_post_ra>
// kernel: tile.9
= control target key start
LH: loop header
LB: loop body
LE: loop exit
PB: predicated region body
PF: predicated region fallthrough
CT: control target
= control target key end

     0   :  { %vm68_vm0 = vcmask 1047556   ;;  %s167_s9 = smov 16   ;;  %s168_s10 = smov 8   ;;  %vm70_vm1 = vcmask 64512   ;;  %vm89_vm2 = vcmask 261312   ;;  %vm110_vm3 = vcmask 195712   ;;  %s259_s0 = inlined_call_operand.vmem [shape: f32[2,1,8,4,8], index: 0, kind: input, shape index: {}]   ;;  %s260_s1 = inlined_call_operand.vmem [shape: f32[16,32], index: 1, kind: output, shape index: {}]  }
   0x1   :  { %v152_v0 = vld [vmem:[%s259_s0 + $0x1c] sm:$0xf]  ;;  %v153_v1 = vld [vmem:[%s259_s0 + $0x18] sm:$0xf]  ;;  %v154_v2 = vld [vmem:[%s259_s0 + $0x14] sm:$0xf] }
   0x2   :  { %39 = vst [vmem:[#allocation0 + $0x38] sm:$0xf] %v152_v0  ;;  %v155_v3 = vld [vmem:[%s259_s0 + $0x10] sm:$0xf]  ;;  %v156_v4 = vld [vmem:[%s259_s0 + $0xc] sm:$0xf] }
   0x3   :  { %43 = vst [vmem:[#allocation0 + $0x30] sm:$0xf] %v153_v1  ;;  %v157_v5 = vld [vmem:[%s259_s0 + $0x8] sm:$0xf]  ;;  %v158_v6 = vld [vmem:[%s259_s0 + $0x4] sm:$0xf] }
   0x4   :  { %47 = vst [vmem:[#allocation0 + $0x28] sm:$0xf] %v154_v2  ;;  %v64_v7 = vld [vmem:[%s259_s0] sm:$0xf]  ;;  %v144_v8 = vld [vmem:[%s259_s0 + $0x3c] sm:$0xf] }
   0x5   :  { %51 = vst [vmem:[#allocation0 + $0x20] sm:$0xf] %v155_v3  ;;  %v145_v9 = vld [vmem:[%s259_s0 + $0x38] sm:$0xf]  ;;  %v146_v10 = vld [vmem:[%s259_s0 + $0x34] sm:$0xf] }
   0x6   :  { %55 = vst [vmem:[#allocation0 + $0x18] sm:$0xf] %v156_v4  ;;  %v147_v11 = vld [vmem:[%s259_s0 + $0x30] sm:$0xf]  ;;  %v148_v12 = vld [vmem:[%s259_s0 + $0x2c] sm:$0xf] }
   0x7   :  { %59 = vst [vmem:[#allocation0 + $0x10] sm:$0xf] %v157_v5  ;;  %v149_v13 = vld [vmem:[%s259_s0 + $0x28] sm:$0xf]  ;;  %v150_v15 = vld [vmem:[%s259_s0 + $0x24] sm:$0xf] }
   0x8   :  { %63 = vst [vmem:[#allocation0 + $0x8] sm:$0xf] %v158_v6  ;;  %v151_v17 = vld [vmem:[%s259_s0 + $0x20] sm:$0xf]  ;;  %s166_s0 = smov 24   ;;  %vm131_vm4 = vcmask 130112  }
   0x9   :  { %65 = vst [vmem:[#allocation0] sm:$0xf] %v64_v7 }
   0xa   :  { %7 = vst [vmem:[#allocation0 + $0x78] sm:$0xf] %v144_v8 }
   0xb   :  { %11 = vst [vmem:[#allocation0 + $0x70] sm:$0xf] %v145_v9 }
   0xc   :  { %v84_v14 = vld [vmem:[#allocation0 + $0x3] ss:$8 sm:$0xf0]   ;;  %15 = vst [vmem:[#allocation0 + $0x68] sm:$0xf] %v146_v10 }
   0xd   :  { %v105_v16 = vld [vmem:[#allocation0 + $0x2] ss:$8 sm:$0xf0]   ;;  %19 = vst [vmem:[#allocation0 + $0x60] sm:$0xf] %v147_v11 }
   0xe   :  { %23 = vst [vmem:[#allocation0 + $0x58] sm:$0xf] %v148_v12  ;;  %v126_v18 = vld [vmem:[#allocation0 + $0x1] ss:$8 sm:$0xf0]  }
   0xf   :  { %27 = vst [vmem:[#allocation0 + $0x50] sm:$0xf] %v149_v13  ;;  %v67_v35 = vld [vmem:[#allocation0] ss:$8 sm:$0xf0]  }
  0x10   :  { %v82_v19 = vld [vmem:[#allocation0 + $0x3] ss:$8 sm:$0xf]   ;;  %v103_v20 = vld [vmem:[#allocation0 + $0x2] ss:$8 sm:$0xf]  }
  0x11   :  { %v86_v21 = vsel %vm68_vm0, %v84_v14, %v82_v19  ;;  %v107_v22 = vsel %vm68_vm0, %v105_v16, %v103_v20  ;;  %v124_v23 = vld [vmem:[#allocation0 + $0x1] ss:$8 sm:$0xf]   ;;  %31 = vst [vmem:[#allocation0 + $0x48] sm:$0xf] %v150_v15 }
  0x12   :  { %87 = vrot.lane.b32.xlu0 %v86_v21, %s166_s0  ;;  %108 = vrot.lane.b32.xlu1 %v107_v22, %s167_s9  ;;  %v128_v24 = vsel %vm68_vm0, %v126_v18, %v124_v23  ;;  %35 = vst [vmem:[#allocation0 + $0x40] sm:$0xf] %v151_v17  ;;  %v66_v34 = vld [vmem:[#allocation0] ss:$8 sm:$0xf]  }
  0x13   :  { %129 = vrot.lane.b32.xlu2 %v128_v24, %s168_s10  ;;  %v69_v36 = vsel %vm68_vm0, %v67_v35, %v66_v34 }
  0x14   :  { %v94_v25 = vld [vmem:[#allocation0 + $0x43] ss:$8 sm:$0xf0]   ;;  %v115_v26 = vld [vmem:[#allocation0 + $0x42] ss:$8 sm:$0xf0]  }
  0x15   :  { %v136_v27 = vld [vmem:[#allocation0 + $0x41] ss:$8 sm:$0xf0]   ;;  %71 = vst.msk [vmem:[%s260_s1] sm:$0xff] %vm70_vm1, %v69_v36  }
  0x16   :  { %v75_v38 = vld [vmem:[#allocation0 + $0x40] ss:$8 sm:$0xf0]  }
  0x19   :  { %v92_v28 = vld [vmem:[#allocation0 + $0x43] ss:$8 sm:$0xf]   ;;  %v113_v29 = vld [vmem:[#allocation0 + $0x42] ss:$8 sm:$0xf]  }
  0x1a   :  { %v96_v30 = vsel %vm68_vm0, %v94_v25, %v92_v28  ;;  %v117_v31 = vsel %vm68_vm0, %v115_v26, %v113_v29  ;;  %v134_v32 = vld [vmem:[#allocation0 + $0x41] ss:$8 sm:$0xf]   ;;  %v73_v37 = vld [vmem:[#allocation0 + $0x40] ss:$8 sm:$0xf]  }
  0x1b   :  { %97 = vrot.lane.b32.xlu0 %v96_v30, %s166_s0  ;;  %118 = vrot.lane.b32.xlu1 %v117_v31, %s167_s9  ;;  %v138_v33 = vsel %vm68_vm0, %v136_v27, %v134_v32  ;;  %v77_v40 = vsel %vm68_vm0, %v75_v38, %v73_v37 }
  0x1c   :  { %139 = vrot.lane.b32.xlu2 %v138_v33, %s168_s10  ;;  %159 = vst.msk [vmem:[%s260_s1 + $0x8] sm:$0xff] %vm70_vm1, %v77_v40  }
  0x6d   :  { %v130_v39 = vpop.permute.xlu2 %129  }
  0x76   :  { %v140_v41 = vpop.permute.xlu2 %139  }
  0x84   :  { %v88_v42 = vpop.permute.xlu0 %87   ;;  %v109_v43 = vpop.permute.xlu1 %108  }
  0x85   :  { %90 = vst.msk [vmem:[%s260_s1] sm:$0xff] %vm89_vm2, %v88_v42  }
  0x86   :  { %111 = vst.msk [vmem:[%s260_s1] sm:$0xff] %vm110_vm3, %v109_v43  }
  0x87   :  { %132 = vst.msk [vmem:[%s260_s1] sm:$0xff] %vm131_vm4, %v130_v39  }
  0x8d   :  { %v98_v44 = vpop.permute.xlu0 %97   ;;  %v119_v45 = vpop.permute.xlu1 %118  }
  0x8e   :  { %160 = vst.msk [vmem:[%s260_s1 + $0x8] sm:$0xff] %vm89_vm2, %v98_v44  }
  0x8f   :  { %161 = vst.msk [vmem:[%s260_s1 + $0x8] sm:$0xff] %vm110_vm3, %v119_v45  }
  0x90   :  { %162 = vst.msk [vmem:[%s260_s1 + $0x8] sm:$0xff] %vm131_vm4, %v140_v41  }

// kernel: transformer_block.1
= control target key start
LH: loop header
LB: loop body
LE: loop exit
PB: predicated region body
PF: predicated region fallthrough
CT: control target
= control target key end

     0   :  { %v91_v2 = vlaneseq  ;;  %s1002_s0 = inlined_call_operand.vmem [shape: f32[48,32], index: 0, kind: input, shape index: {}]   ;;  %s1003_s1 = inlined_call_operand.vmem [shape: f32[16,32], index: 1, kind: input, shape index: {}]   ;;  %s1004_s2 = inlined_call_operand.vmem [shape: f32[32,96], index: 2, kind: input, shape index: {}]   ;;  %s1005_s3 = inlined_call_operand.vmem [shape: f32[32,32], index: 3, kind: input, shape index: {}]   ;;  %s1006_s4 = inlined_call_operand.vmem [shape: f32[32,128], index: 4, kind: input, shape index: {}]   ;;  %s1007_s5 = inlined_call_operand.vmem [shape: f32[128,32], index: 5, kind: input, shape index: {}]   ;;  %s1008_s6 = inlined_call_operand.vmem [shape: f32[8,128], index: 6, kind: input, shape index: {}]   ;;  %s1009_s7 = inlined_call_operand.hbm [shape: f32[16,32], index: 7, kind: output, shape index: {}]  }
   0x1   :  { %v36_v0 = vld [vmem:[%s1004_s2 + $0x18] sm:$0xff]  ;;  %v35_v1 = vld [vmem:[%s1004_s2 + $0x10] sm:$0xff]  ;;  %v34_v3 = vld [vmem:[%s1004_s2 + $0x8] sm:$0xff] }
   0x2   :  { %68 = vmatpush.msra.mxu0 %v36_v0  ;;  %646 = vmatpush.msra.mxu2 %v36_v0  ;;  %v92_v4 = vshrl.u32 %v91_v2, 7  ;;  %v97_v5 = vand.u32 127, %v91_v2 }
   0x3   :  { %12 = vsyncpa [#allocation3], 0  ;;  %v33_v6 = vld [vmem:[%s1004_s2] sm:$0xff]  ;;  %vm37_vm0 = vcmask 261120   ;;  %v733_v20 = vmov 0.0   ;;  %s734_s2 = smov 32  }
   0x4   :  { %69 = vmatpush.msra.mxu0 %v35_v1  ;;  %647 = vmatpush.msra.mxu2 %v35_v1  ;;  %v95_v7 = vadd.s32 24, %v92_v4  ;;  %v102_v8 = vshra.s32 %v97_v5, 3  ;;  %v94_v9 = vadd.s32 16, %v92_v4  ;;  %v93_v10 = vadd.s32 8, %v92_v4  ;;  %v797_v11 = vld [vmem:[%s1002_s0] sm:$0xff]  ;;  %v828_v27 = vld [vmem:[%s1002_s0 + $0x8] sm:$0xff] }
   0x5   :  { %v98_v12 = vshra.s32 %v92_v4, 3  ;;  %v29_v28 = vld [vmem:[%s1002_s0 + $0x10] sm:$0xff]  ;;  %v30_v29 = vld [vmem:[%s1002_s0 + $0x18] sm:$0xff]  ;;  %s735_s17 = smov 96   ;;  %s736_s18 = smov 64   ;;  %v31_v46 = vld [vmem:[%s1002_s0 + $0x20] sm:$0xff] }
   0x6   :  { %70 = vmatpush.msra.mxu0 %v34_v3  ;;  %648 = vmatpush.msra.mxu2 %v34_v3  ;;  %v101_v13 = vshra.s32 %v95_v7, 3  ;;  %v100_v14 = vshra.s32 %v94_v9, 3  ;;  %v99_v15 = vshra.s32 %v93_v10, 3  ;;  %v32_v47 = vld [vmem:[%s1002_s0 + $0x28] sm:$0xff]  ;;  %v376_v18 = vld [vmem:[%s1005_s3 + $0x18] sm:$0xff]  ;;  %v375_v16 = vld [vmem:[%s1005_s3 + $0x10] sm:$0xff] }
   0x7   :  { %vm799_vm1 = vcmp.eq.s32.totalorder %v98_v12, %v102_v8  ;;  %v374_v19 = vld [vmem:[%s1005_s3 + $0x8] sm:$0xff]  ;;  %s740_s0 = smov 128   ;;  %s741_s23 = smov 8  }
   0x8   :  { %71 = vmatpush.msra.mxu0 %v33_v6  ;;  %649 = vmatpush.msra.mxu2 %v33_v6  ;;  %vm805_vm2 = vcmp.eq.s32.totalorder %v101_v13, %v102_v8  ;;  %vm809_vm3 = vcmp.eq.s32.totalorder %v100_v14, %v102_v8  ;;  %vm813_vm4 = vcmp.eq.s32.totalorder %v99_v15, %v102_v8  ;;  %v620_v23 = vsel %vm799_vm1, 1.0, %v733_v20  ;;  %v225_v13 = vld [vmem:[%s1003_s1] sm:$0xff] }
   0x9   :  { %614 = vmatmul.msk.f32.vlgmr.msra.gmra.mxu0 %vm37_vm0, %v797_v11  ;;  %v623_v21 = vsel %vm805_vm2, 1.0, %v733_v20  ;;  %v622_v22 = vsel %vm809_vm3, 1.0, %v733_v20  ;;  %v621_v24 = vsel %vm813_vm4, 1.0, %v733_v20  ;;  %618 = vmatmul.msk.f32.vlgmr.msra.gmra.mxu2 %vm37_vm0, %v31_v46 }
   0xa   :  { %125 = vrot.lane.b32.xlu0 %v623_v21, %s734_s2  ;;  %v659_v25 = vpack.i.bf16 %v622_v22, %v623_v21  ;;  %v664_v26 = vpack.i.bf16 %v620_v23, %v621_v24  ;;  %121 = vrot.lane.b32.xlu1 %v621_v24, %s734_s2  ;;  %v226_v21 = vld [vmem:[%s1003_s1 + $0x8] sm:$0xff] }
  0x11   :  { %615 = vmatmul.msk.f32.gmra.mxu0 %vm37_vm0, %v828_v27  ;;  %619 = vmatmul.msk.f32.gmra.mxu2 %vm37_vm0, %v32_v47 }
  0x12   :  { %123 = vrot.lane.b32.xlu0 %v622_v22, %s734_s2  ;;  %119 = vrot.lane.b32.xlu1 %v620_v23, %s734_s2 }
  0x19   :  { %616 = vmatmul.msk.f32.gmra.mxu0 %vm37_vm0, %v29_v28 }
  0x21   :  { %617 = vmatmul.msk.f32.gmra.mxu0 %vm37_vm0, %v30_v29 }
  0x7c   :  { %v126_v31 = vpop.permute.xlu0 %125  ;;  %v122_v37 = vpop.permute.xlu1 %121 }
  0x84   :  { %v124_v33 = vpop.permute.xlu0 %123  ;;  %v120_v42 = vpop.permute.xlu1 %119 }
  0x86   :  { %v73_v30 = vpop.f32.mrf.mxu0 }
  0x8c   :  { %v85_v59 = vpop.f32.mrf.mxu2 }
  0x8e   :  { %v76_v32 = vpop.f32.mrf.mxu0 }
  0x94   :  { %v88_v2 = vpop.f32.mrf.mxu2 }
  0x96   :  { %v79_v34 = vpop.f32.mrf.mxu0 }
  0x97   :  { %v134_v35 = vmul.f32 %v126_v31, %v79_v34  ;;  %v133_v36 = vmul.f32 %v124_v33, %v79_v34  ;;  %v132_v43 = vmul.f32 %v122_v37, %v79_v34  ;;  %v131_v44 = vmul.f32 %v120_v42, %v79_v34 }
  0x99   :  { %145 = vrot.lane.b32.xlu2 %v134_v35, %s735_s17  ;;  %143 = vrot.lane.b32.xlu0 %v133_v36, %s735_s17 }
  0x9e   :  { %v82_v38 = vpop.f32.mrf.mxu0 }
  0x9f   :  { %v181_v39 = vmul.f32 %v126_v31, %v82_v38  ;;  %v180_v40 = vmul.f32 %v124_v33, %v82_v38  ;;  %v179_v41 = vmul.f32 %v122_v37, %v82_v38  ;;  %v178_v45 = vmul.f32 %v120_v42, %v82_v38 }
  0xa0   :  { %v737_v38 = vmov 1.0  }
  0xa1   :  { %192 = vrot.lane.b32.xlu2 %v181_v39, %s735_s17  ;;  %190 = vrot.lane.b32.xlu1 %v180_v40, %s735_s17 }
  0xa2   :  { %188 = vrot.lane.b32.xlu0 %v179_v41, %s735_s17  ;;  %634 = vmatpush.msk.msra.mxu3 %vm805_vm2, %v737_v38 }
  0xa4   :  { %635 = vmatpush.msk.msra.mxu3 %vm809_vm3, %v737_v38 }
  0xa6   :  { %636 = vmatpush.msk.msra.mxu3 %vm813_vm4, %v737_v38 }
  0xa8   :  { %637 = vmatpush.msk.msra.mxu3 %vm799_vm1, %v737_v38 }
  0xa9   :  { %141 = vrot.lane.b32.xlu2 %v132_v43, %s735_s17  ;;  %139 = vrot.lane.b32.xlu1 %v131_v44, %s735_s17 }
  0xaa   :  { %396 = vmatpush.msrb.mxu3 %v376_v18 }
  0xac   :  { %397 = vmatpush.msrb.mxu3 %v375_v16 }
  0xae   :  { %398 = vmatpush.msrb.mxu3 %v374_v19  ;;  %v510_v19 = vld [vmem:[%s1007_s5 + $0x40] sm:$0xff] }
  0xb1   :  { %186 = vrot.lane.b32.xlu2 %v178_v45, %s735_s17 }
  0xb9   :  { %660 = vrot.lane.b32.xlu2 %v659_v25, %s736_s18 }
  0xc1   :  { %665 = vrot.lane.b32.xlu2 %v664_v26, %s736_s18 }
  0xf3   :  { %v146_v48 = vpop.permute.xlu2 %145 }
  0xf4   :  { %624 = vmatpush.xpose.msk.msra.mxu1 %vm37_vm0, %v146_v48 }
  0xfb   :  { %v193_v49 = vpop.permute.xlu2 %192 }
  0xfc   :  { %629 = vmatpush.xpose.msk.msrb.mxu2 %vm37_vm0, %v193_v49 }
 0x103   :  { %v142_v51 = vpop.permute.xlu2 %141 }
 0x10b   :  { %v144_v50 = vpop.permute.xlu0 %143  ;;  %v187_v54 = vpop.permute.xlu2 %186 }
 0x10c   :  { %625 = vmatpush.xpose.msk.msra.mxu1 %vm37_vm0, %v144_v50 }
 0x110   :  { %626 = vmatpush.xpose.msk.msra.mxu1 %vm37_vm0, %v142_v51 }
 0x113   :  { %v191_v52 = vpop.permute.xlu1 %190  ;;  %v661_v56 = vpop.permute.xlu2 %660 }
 0x114   :  { %630 = vmatpush.xpose.msk.msrb.mxu2 %vm37_vm0, %v191_v52  ;;  %v189_v53 = vpop.permute.xlu0 %188  ;;  %v663_v57 = vunpack.i.h.bf16 %v661_v56  ;;  %v662_v58 = vunpack.i.l.bf16 %v661_v56  ;;  %v373_v52 = vld [vmem:[%s1005_s3] sm:$0xff] }
 0x115   :  { %399 = vmatpush.msrb.mxu3 %v373_v52 }
 0x116   :  { %v288_v61 = vmul.f32 %v663_v57, %v85_v59  ;;  %v289_v62 = vmul.f32 %v662_v58, %v85_v59  ;;  %v332_v4 = vmul.f32 %v662_v58, %v88_v2  ;;  %v331_v7 = vmul.f32 %v663_v57, %v88_v2 }
 0x118   :  { %631 = vmatpush.xpose.msk.msrb.mxu2 %vm37_vm0, %v189_v53  ;;  %v669_v63 = vpack.i.bf16 %v288_v61, %v289_v62 }
 0x11a   :  { %670 = vrot.lane.b32.xlu2 %v669_v63, %s736_s18 }
 0x11b   :  { %v140_v55 = vpop.permute.xlu1 %139  ;;  %v666_v60 = vpop.permute.xlu2 %665 }
 0x11c   :  { %627 = vmatpush.xpose.msk.msra.mxu1 %vm37_vm0, %v140_v55  ;;  %632 = vmatpush.xpose.msk.msrb.mxu2 %vm37_vm0, %v187_v54  ;;  %v667_v0 = vunpack.i.l.bf16 %v666_v60  ;;  %v668_v3 = vunpack.i.h.bf16 %v666_v60  ;;  %v901_v55 = vld [vmem:[%s1008_s6] sm:$0xff] }
 0x11d   :  { %v377_v56 = vperm.slane %v901_v55, 0  ;;  %v463_v16 = vperm.slane %v901_v55, 2 }
 0x11e   :  { %v287_v1 = vmul.f32 %v667_v0, %v85_v59  ;;  %v286_v6 = vmul.f32 %v668_v3, %v85_v59  ;;  %v329_v9 = vmul.f32 %v668_v3, %v88_v2  ;;  %v330_v10 = vmul.f32 %v667_v0, %v88_v2 }
 0x11f   :  { %628 = vmatmul.msk.f32.vlgmr.msra.gmra.mxu1 %vm37_vm0, %v73_v30  ;;  %633 = vmatmul.msk.f32.vlgmr.msrb.gmra.mxu2 %vm37_vm0, %v76_v32 }
 0x120   :  { %v674_v5 = vpack.i.bf16 %v287_v1, %v332_v4  ;;  %v679_v8 = vpack.i.bf16 %v286_v6, %v331_v7  ;;  %v684_v12 = vpack.i.bf16 %v329_v9, %v330_v10  ;;  %v738_v1 = vmov 32.0  }
 0x122   :  { %675 = vrot.lane.b32.xlu2 %v674_v5, %s736_s18 }
 0x12a   :  { %680 = vrot.lane.b32.xlu2 %v679_v8, %s736_s18 }
 0x132   :  { %685 = vrot.lane.b32.xlu2 %v684_v12, %s736_s18 }
 0x174   :  { %v671_v25 = vpop.permute.xlu2 %670 }
 0x175   :  { %v672_v26 = vunpack.i.l.bf16 %v671_v25  ;;  %v673_v28 = vunpack.i.h.bf16 %v671_v25 }
 0x177   :  { %321 = vmatpush.msrb.mxu1 %v672_v26 }
 0x179   :  { %322 = vmatpush.msrb.mxu1 %v673_v28 }
 0x17c   :  { %v676_v29 = vpop.permute.xlu2 %675 }
 0x17d   :  { %v677_v30 = vunpack.i.l.bf16 %v676_v29  ;;  %v678_v31 = vunpack.i.h.bf16 %v676_v29 }
 0x17f   :  { %323 = vmatpush.msrb.mxu1 %v678_v31  ;;  %364 = vmatpush.msra.mxu2 %v677_v30  ;;  %v517_v30 = vld [vmem:[%s1007_s5 + $0x78] sm:$0xff]  ;;  %v516_v31 = vld [vmem:[%s1007_s5 + $0x70] sm:$0xff] }
 0x180   :  { %519 = vmatpush.msrb.mxu0 %v517_v30 }
 0x182   :  { %520 = vmatpush.msrb.mxu0 %v516_v31 }
 0x184   :  { %v681_v32 = vpop.permute.xlu2 %680 }
 0x185   :  { %v682_v33 = vunpack.i.l.bf16 %v681_v32  ;;  %v683_v34 = vunpack.i.h.bf16 %v681_v32 }
 0x187   :  { %324 = vmatpush.msrb.mxu1 %v683_v34  ;;  %365 = vmatpush.msra.mxu2 %v682_v33  ;;  %v515_v33 = vld [vmem:[%s1007_s5 + $0x68] sm:$0xff] }
 0x188   :  { %521 = vmatpush.msrb.mxu0 %v515_v33 }
 0x18c   :  { %v686_v35 = vpop.permute.xlu2 %685 }
 0x18d   :  { %v688_v36 = vunpack.i.h.bf16 %v686_v35  ;;  %v687_v37 = vunpack.i.l.bf16 %v686_v35 }
 0x18f   :  { %366 = vmatpush.msra.mxu2 %v687_v37  ;;  %v514_v37 = vld [vmem:[%s1007_s5 + $0x60] sm:$0xff] }
 0x190   :  { %522 = vmatpush.msrb.mxu0 %v514_v37 }
 0x191   :  { %367 = vmatpush.msra.mxu2 %v688_v36 }
 0x19c   :  { %v175_v14 = vpop.f32.mrf.mxu1 }
 0x19d   :  { %v227_v15 = vadd.f32 %v225_v13, %v175_v14 }
 0x19f   :  { %v229_v20 = vsel %vm37_vm0, %v227_v15, -inf }
 0x1a0   :  { %230 = vmax.xlane.f32.xlu0 %v229_v20 }
 0x1a2   :  { %v222_v22 = vpop.f32.mrf.mxu2 }
 0x1a3   :  { %v228_v23 = vadd.f32 %v226_v21, %v222_v22  ;;  %v469_v21 = vld [vmem:[%s1006_s4 + $0x18] sm:$0xff]  ;;  %v468_v22 = vld [vmem:[%s1006_s4 + $0x10] sm:$0xff] }
 0x1a4   :  { %489 = vmatpush.msra.mxu1 %v469_v21 }
 0x1a5   :  { %v232_v24 = vsel %vm37_vm0, %v228_v23, -inf }
 0x1a6   :  { %233 = vmax.xlane.f32.xlu1 %v232_v24  ;;  %490 = vmatpush.msra.mxu1 %v468_v22  ;;  %v466_v24 = vld [vmem:[%s1006_s4] sm:$0xff] }
 0x213   :  { %v231_v39 = vpop.xlane.xlu0 %230 }
 0x214   :  { %v235_v40 = vsub.f32 %v227_v15, %v231_v39 }
 0x216   :  { %v237_v41 = vmul.f32 1.442695, %v235_v40  ;;  %v513_v40 = vld [vmem:[%s1007_s5 + $0x58] sm:$0xff] }
 0x217   :  { %523 = vmatpush.msrb.mxu0 %v513_v40 }
 0x218   :  { %689 = vpow2.f32 %v237_v41 }
 0x219   :  { %v234_v42 = vpop.xlane.xlu1 %233 }
 0x21a   :  { %v236_v43 = vsub.f32 %v228_v23, %v234_v42  ;;  %v467_v23 = vld [vmem:[%s1006_s4 + $0x8] sm:$0xff]  ;;  %v512_v42 = vld [vmem:[%s1007_s5 + $0x50] sm:$0xff]  ;;  %s602_s4 = sshll.u32 %s1009_s7, 4  ;;  %s603_s4 = int_to_ptr.hbm [resolvable:$true] %s602_s4 }
 0x21b   :  { %491 = vmatpush.msra.mxu1 %v467_v23  ;;  %524 = vmatpush.msrb.mxu0 %v512_v42 }
 0x21c   :  { %v239_v44 = vmul.f32 1.442695, %v236_v43 }
 0x21d   :  { %492 = vmatpush.msra.mxu1 %v466_v24 }
 0x21e   :  { %v690_v45 = vpop.eup %689  ;;  %691 = vpow2.f32 %v239_v44  ;;  %v460_v44 = vperm.slane %v901_v55, 1 }
 0x21f   :  { %638 = vmatmul.msk.f32.vlgmr.msra.gmra.mxu3 %vm37_vm0, %v690_v45 }
 0x224   :  { %v692_v17 = vpop.eup %691 }
 0x227   :  { %639 = vmatmul.msk.f32.gmra.mxu3 %vm37_vm0, %v692_v17 }
 0x2a2   :  { %v264_v46 = vpop.f32.mrf.mxu3 }
 0x2a3   :  { %693 = vrcp.f32 %v264_v46 }
 0x2a9   :  { %v694_v47 = vpop.eup %693 }
 0x2aa   :  { %v267_v48 = vpop.f32.mrf.mxu3  ;;  %v272_v49 = vmul.f32 %v694_v47, %v690_v45  ;;  %v511_v45 = vld [vmem:[%s1007_s5 + $0x48] sm:$0xff] }
 0x2ab   :  { %695 = vrcp.f32 %v267_v48  ;;  %525 = vmatpush.msrb.mxu0 %v511_v45  ;;  %v509_v48 = vld [vmem:[%s1007_s5 + $0x38] sm:$0xff] }
 0x2ac   :  { %640 = vmatmul.msk.f32.vlgmr.msrb.gmra.mxu1 %vm37_vm0, %v272_v49  ;;  %697 = vrcp.f32 %v738_v1  ;;  %v503_v1 = vld [vmem:[%s1007_s5 + $0x8] sm:$0xff] }
 0x2ad   :  { %526 = vmatpush.msrb.mxu0 %v510_v19  ;;  %v591_v19 = vperm.slane %v901_v55, 6 }
 0x2af   :  { %527 = vmatpush.msrb.mxu0 %v509_v48 }
 0x2b1   :  { %v696_v50 = vpop.eup %695 }
 0x2b2   :  { %v273_v51 = vmul.f32 %v696_v50, %v692_v17  ;;  %v698_v2 = vpop.eup %697 }
 0x2b3   :  { %v416_v3 = vmul.f32 32.0, %v698_v2  ;;  %vm420_vm5 = vweird.f32 %v698_v2 }
 0x2b4   :  { %641 = vmatmul.msk.f32.vlgmr.msra.gmra.mxu2 %vm37_vm0, %v273_v51  ;;  %v508_v51 = vld [vmem:[%s1007_s5 + $0x30] sm:$0xff] }
 0x2b5   :  { %v417_v4 = vsub.f32 1.0, %v416_v3  ;;  %528 = vmatpush.msrb.mxu0 %v508_v51  ;;  %v470_v3 = vperm.slane %v901_v55, 3 }
 0x2b7   :  { %v418_v5 = vmul.f32 %v698_v2, %v417_v4 }
 0x2b9   :  { %v419_v6 = vadd.f32 %v698_v2, %v418_v5 }
 0x2bb   :  { %v908_v7 = vsel %vm420_vm5, %v698_v2, %v419_v6  ;;  %v502_v2 = vld [vmem:[%s1007_s5] sm:$0xff] }
 0x329   :  { %v326_v53 = vpop.f32.mrf.mxu1 }
 0x32a   :  { %642 = vmatmul.msk.f32.vlgmr.msrb.gmra.mxu3 %vm37_vm0, %v326_v53  ;;  %v507_v53 = vld [vmem:[%s1007_s5 + $0x28] sm:$0xff] }
 0x32b   :  { %529 = vmatpush.msrb.mxu0 %v507_v53 }
 0x337   :  { %v369_v54 = vpop.f32.mrf.mxu2 }
 0x338   :  { %643 = vmatmul.msk.f32.gmra.mxu3 %vm37_vm0, %v369_v54 }
 0x3ad   :  { %v401_v57 = vpop.f32.mrf.mxu3 }
 0x3ae   :  { %v402_v58 = vadd.f32 %v401_v57, %v377_v56 }
 0x3b0   :  { %v407_v59 = vadd.f32 %v402_v58, %v797_v11  ;;  %v505_v58 = vld [vmem:[%s1007_s5 + $0x18] sm:$0xff] }
 0x3b2   :  { %v409_v60 = vsel %vm37_vm0, %v407_v59, 0.0 }
 0x3b3   :  { %410 = vadd.xlane.f32.xlu0 %v409_v60 }
 0x3bb   :  { %v404_v61 = vpop.f32.mrf.mxu3 }
 0x3bc   :  { %v405_v62 = vadd.f32 %v404_v61, %v377_v56  ;;  %v506_v56 = vld [vmem:[%s1007_s5 + $0x20] sm:$0xff] }
 0x3bd   :  { %530 = vmatpush.msrb.mxu0 %v506_v56 }
 0x3be   :  { %v408_v63 = vadd.f32 %v405_v62, %v828_v27 }
 0x3bf   :  { %531 = vmatpush.msrb.mxu0 %v505_v58 }
 0x3c0   :  { %v412_v0 = vsel %vm37_vm0, %v408_v63, 0.0 }
 0x3c1   :  { %413 = vadd.xlane.f32.xlu1 %v412_v0  ;;  %v504_v0 = vld [vmem:[%s1007_s5 + $0x10] sm:$0xff]  ;;  %s739_s5 = smov [#allocation2]  }
 0x3c2   :  { %532 = vmatpush.msrb.mxu0 %v504_v0  ;;  %s600_s20 = sshll.u32 %s739_s5, 4  ;;  %s601_s20 = int_to_ptr.vmem [resolvable:$true] %s600_s20 }
 0x3c4   :  { %533 = vmatpush.msrb.mxu0 %v503_v1 }
 0x3c6   :  { %534 = vmatpush.msrb.mxu0 %v502_v2 }
 0x426   :  { %v411_v11 = vpop.xlane.xlu0 %410 }
 0x427   :  { %v422_v8 = vmul.f32 %v908_v7, %v411_v11 }
 0x429   :  { %v424_v9 = vsub.f32 %v407_v59, %v422_v8 }
 0x42b   :  { %v426_v10 = vmul.f32 %v424_v9, %v424_v9 }
 0x42d   :  { %v428_v27 = vsel %vm37_vm0, %v426_v10, 0.0  ;;  %v518_v10 = vperm.slane %v901_v55, 4 }
 0x42e   :  { %429 = vadd.xlane.f32.xlu2 %v428_v27 }
 0x434   :  { %v414_v12 = vpop.xlane.xlu1 %413 }
 0x435   :  { %v423_v13 = vmul.f32 %v908_v7, %v414_v12 }
 0x437   :  { %v913_v14 = vsub.f32 %v408_v63, %v423_v13 }
 0x439   :  { %v427_v15 = vmul.f32 %v913_v14, %v913_v14 }
 0x43b   :  { %v431_v20 = vsel %vm37_vm0, %v427_v15, 0.0 }
 0x43c   :  { %432 = vadd.xlane.f32.xlu0 %v431_v20 }
 0x4a1   :  { %v430_v25 = vpop.xlane.xlu2 %429 }
 0x4a2   :  { %v434_v26 = vmul.f32 %v430_v25, %v908_v7 }
 0x4a4   :  { %v436_v28 = vadd.f32 1e-05, %v434_v26 }
 0x4a6   :  { %699 = vrsqrt.f32 %v436_v28  ;;  %vm444_vm7 = vweird.f32 %v436_v28 }
 0x4ac   :  { %v700_v29 = vpop.eup %699 }
 0x4ad   :  { %v439_v32 = vmul.f32 %v700_v29, %v436_v28  ;;  %vm445_vm6 = vweird.f32 %v700_v29 }
 0x4ae   :  { %vm446_vm8 = vmor %vm444_vm7, %vm445_vm6 }
 0x4af   :  { %v440_v34 = vmul.f32 %v700_v29, %v439_v32  ;;  %v433_v35 = vpop.xlane.xlu0 %432 }
 0x4b0   :  { %v435_v36 = vmul.f32 %v433_v35, %v908_v7 }
 0x4b1   :  { %v441_v38 = vmul.f32 0.5, %v440_v34 }
 0x4b2   :  { %v437_v39 = vadd.f32 1e-05, %v435_v36 }
 0x4b3   :  { %v442_v41 = vsub.f32 1.5, %v441_v38 }
 0x4b4   :  { %701 = vrsqrt.f32 %v437_v39  ;;  %vm454_vm10 = vweird.f32 %v437_v39 }
 0x4b5   :  { %v443_v43 = vmul.f32 %v700_v29, %v442_v41 }
 0x4b7   :  { %v447_v17 = vsel %vm446_vm8, %v700_v29, %v443_v43 }
 0x4b8   :  { %v458_v18 = vmul.f32 %v447_v17, %v424_v9  ;;  %v588_v17 = vperm.slane %v901_v55, 5 }
 0x4ba   :  { %v702_v46 = vpop.eup %701  ;;  %v461_v47 = vmul.f32 %v460_v44, %v458_v18 }
 0x4bb   :  { %v449_v49 = vmul.f32 %v702_v46, %v437_v39  ;;  %vm455_vm9 = vweird.f32 %v702_v46 }
 0x4bc   :  { %v464_v50 = vadd.f32 %v463_v16, %v461_v47  ;;  %vm456_vm11 = vmor %vm454_vm10, %vm455_vm9 }
 0x4bd   :  { %v450_v52 = vmul.f32 %v702_v46, %v449_v49 }
 0x4be   :  { %644 = vmatmul.msk.f32.vlgmr.msra.gmra.mxu1 %vm37_vm0, %v464_v50 }
 0x4bf   :  { %v451_v54 = vmul.f32 0.5, %v450_v52 }
 0x4c1   :  { %v452_v57 = vsub.f32 1.5, %v451_v54 }
 0x4c3   :  { %v453_v59 = vmul.f32 %v702_v46, %v452_v57 }
 0x4c5   :  { %v457_v60 = vsel %vm456_vm11, %v702_v46, %v453_v59 }
 0x4c6   :  { %v459_v61 = vmul.f32 %v457_v60, %v913_v14 }
 0x4c8   :  { %v462_v62 = vmul.f32 %v460_v44, %v459_v61 }
 0x4ca   :  { %v465_v63 = vadd.f32 %v463_v16, %v462_v62 }
 0x4cc   :  { %645 = vmatmul.msk.f32.gmra.mxu1 %vm37_vm0, %v465_v63 }
 0x53b   :  { %v494_v4 = vpop.f32.mrf.mxu1 }
 0x53c   :  { %v495_v5 = vadd.f32 %v494_v4, %v470_v3 }
 0x53e   :  { %v500_v6 = vmax.f32 %v495_v5, 0.0 }
 0x540   :  { %535 = vmatmul.f32.vlgmr.msrb.gmra.mxu0 %v500_v6 }
 0x549   :  { %v497_v11 = vpop.f32.mrf.mxu1 }
 0x54a   :  { %v498_v8 = vadd.f32 %v497_v11, %v470_v3 }
 0x54c   :  { %v501_v9 = vmax.f32 %v498_v8, 0.0 }
 0x54e   :  { %538 = vmatmul.f32.gmra.mxu0 %v501_v9 }
 0x5bd   :  { %v536_v27 = vpop.f32.mrf.mxu0 }
 0x5be   :  { %v537_v12 = vadd.f32 %v536_v27, %v518_v10 }
 0x5c0   :  { %v542_v13 = vadd.f32 %v537_v12, %v464_v50 }
 0x5c2   :  { %v544_v14 = vsel %vm37_vm0, %v542_v13, 0.0 }
 0x5c3   :  { %545 = vadd.xlane.f32.xlu1 %v544_v14 }
 0x5cb   :  { %v539_v15 = vpop.f32.mrf.mxu0 }
 0x5cc   :  { %v540_v20 = vadd.f32 %v539_v15, %v518_v10 }
 0x5ce   :  { %v543_v21 = vadd.f32 %v540_v20, %v465_v63 }
 0x5d0   :  { %v547_v22 = vsel %vm37_vm0, %v543_v21, 0.0 }
 0x5d1   :  { %548 = vadd.xlane.f32.xlu0 %v547_v22 }
 0x636   :  { %v546_v23 = vpop.xlane.xlu1 %545 }
 0x637   :  { %v550_v24 = vmul.f32 %v546_v23, %v908_v7 }
 0x639   :  { %v552_v25 = vsub.f32 %v542_v13, %v550_v24 }
 0x63b   :  { %v554_v26 = vmul.f32 %v552_v25, %v552_v25 }
 0x63d   :  { %v556_v28 = vsel %vm37_vm0, %v554_v26, 0.0 }
 0x63e   :  { %557 = vadd.xlane.f32.xlu1 %v556_v28 }
 0x644   :  { %v549_v29 = vpop.xlane.xlu0 %548 }
 0x645   :  { %v551_v30 = vmul.f32 %v549_v29, %v908_v7 }
 0x647   :  { %v553_v31 = vsub.f32 %v543_v21, %v551_v30 }
 0x649   :  { %v555_v32 = vmul.f32 %v553_v31, %v553_v31 }
 0x64b   :  { %v559_v33 = vsel %vm37_vm0, %v555_v32, 0.0 }
 0x64c   :  { %560 = vadd.xlane.f32.xlu0 %v559_v33 }
 0x6b1   :  { %v558_v34 = vpop.xlane.xlu1 %557 }
 0x6b2   :  { %v562_v35 = vmul.f32 %v558_v34, %v908_v7 }
 0x6b4   :  { %v564_v36 = vadd.f32 1e-05, %v562_v35 }
 0x6b6   :  { %703 = vrsqrt.f32 %v564_v36  ;;  %vm572_vm13 = vweird.f32 %v564_v36 }
 0x6bc   :  { %v704_v37 = vpop.eup %703 }
 0x6bd   :  { %v567_v38 = vmul.f32 %v704_v37, %v564_v36  ;;  %vm573_vm12 = vweird.f32 %v704_v37 }
 0x6be   :  { %vm574_vm14 = vmor %vm572_vm13, %vm573_vm12 }
 0x6bf   :  { %v568_v39 = vmul.f32 %v704_v37, %v567_v38  ;;  %v561_v40 = vpop.xlane.xlu0 %560 }
 0x6c0   :  { %v563_v41 = vmul.f32 %v561_v40, %v908_v7 }
 0x6c1   :  { %v569_v42 = vmul.f32 0.5, %v568_v39 }
 0x6c2   :  { %v565_v43 = vadd.f32 1e-05, %v563_v41 }
 0x6c3   :  { %v570_v44 = vsub.f32 1.5, %v569_v42 }
 0x6c4   :  { %705 = vrsqrt.f32 %v565_v43  ;;  %vm582_vm1 = vweird.f32 %v565_v43 }
 0x6c5   :  { %v571_v45 = vmul.f32 %v704_v37, %v570_v44 }
 0x6c7   :  { %v575_v18 = vsel %vm574_vm14, %v704_v37, %v571_v45 }
 0x6c8   :  { %v586_v16 = vmul.f32 %v575_v18, %v552_v25 }
 0x6ca   :  { %v706_v46 = vpop.eup %705  ;;  %v589_v47 = vmul.f32 %v588_v17, %v586_v16 }
 0x6cb   :  { %v577_v48 = vmul.f32 %v706_v46, %v565_v43  ;;  %vm583_vm15 = vweird.f32 %v706_v46 }
 0x6cc   :  { %v592_v49 = vadd.f32 %v591_v19, %v589_v47  ;;  %vm584_vm2 = vmor %vm582_vm1, %vm583_vm15 }
 0x6cd   :  { %v578_v50 = vmul.f32 %v706_v46, %v577_v48 }
 0x6ce   :  { %594 = vst.msk [vmem:[#allocation2] sm:$0xff] %vm37_vm0, %v592_v49 }
 0x6cf   :  { %v579_v7 = vmul.f32 0.5, %v578_v50 }
 0x6d1   :  { %v580_v51 = vsub.f32 1.5, %v579_v7 }
 0x6d3   :  { %v581_v52 = vmul.f32 %v706_v46, %v580_v51 }
 0x6d5   :  { %v585_v53 = vsel %vm584_vm2, %v706_v46, %v581_v52 }
 0x6d6   :  { %v587_v54 = vmul.f32 %v585_v53, %v553_v31 }
 0x6d8   :  { %v590_v55 = vmul.f32 %v588_v17, %v587_v54 }
 0x6da   :  { %v593_v56 = vadd.f32 %v591_v19, %v590_v55 }
 0x6dc   :  { %595 = vst.msk [vmem:[#allocation2 + $0x8] sm:$0xff] %vm37_vm0, %v593_v56 }
 0x6dd   :  { %608 = dma.vmem_to_hbm [thread:$0]  %s601_s20, 256, %s603_s4, [#allocation3], %s740_s0, %s740_s0, %s741_s23  }
 0x6de   :  { %731 = dma.done.wait [#allocation3], 256  }
 0x6df   :  { %732 = vsyncadd [#allocation3], 4294967040 }
 0x6e0   :  { %613 = vsyncpa [#allocation3], 1 }

</bundles_post_ra>
